<compile_context>
chip_gen: v6e
topology: v6e:2x2x1
jax: 0.10.0
libtpu: 0.0.40
codegen_flags: <defaults>
</compile_context>

<pallas_src>
import functools

import jax
import jax.numpy as jnp
from jax import lax
from jax.experimental import pallas as pl
from jax.experimental.pallas import tpu as pltpu

NUM_EMBEDDINGS = 100                 # nn.Embedding(100, n_atom_basis, padding_idx=0)
PADDED_VOCAB = 128                   # vocab padded to 128 for a clean MXU contraction
_TARGET_OUT_BLOCK_BYTES = 1 << 20    # ~1 MiB output blocks
_MAX_GROUP = 16


def _embed_kernel(z_ref, table_ref, s_ref, *, chunk, group):
    """One grid step.

    z_ref:     (gm, group)            int32   grouped atomic numbers
    table_ref: (group*128, group*nb)  float32 block-diagonal embedding table
    s_ref:     (gm, group*nb)         float32 lane-dense output block
    """
    gm = s_ref.shape[0]
    vocab = table_ref.shape[0]                 # group * 128
    table = table_ref[...]                     # resident in VMEM across the grid
    n_chunks = gm // chunk

    def body(i, carry):
        r0 = pl.multiple_of(i * chunk, chunk)
        zc = z_ref[pl.ds(r0, chunk), :]                              # (chunk, group)
        lane = lax.broadcasted_iota(jnp.int32, (chunk, vocab), 1)    # (chunk, vocab)
        onehot = jnp.zeros((chunk, vocab), jnp.float32)
        for j in range(group):                                       # static, group<=16
            tgt = zc[:, j:j + 1] + j * PADDED_VOCAB                  # (chunk, 1)
            onehot = onehot + (lane == tgt).astype(jnp.float32)
        s_ref[pl.ds(r0, chunk), :] = jnp.dot(
            onehot, table, preferred_element_type=jnp.float32
        ).astype(s_ref.dtype)
        return carry

    lax.fori_loop(0, n_chunks, body, 0, unroll=True if n_chunks <= 8 else 8)


def make_embedding_table(key, n_atom_basis):
    """Mimic nn.Embedding(100, nb, padding_idx=0) init: N(0,1), row 0 zeroed."""
    table = jax.random.normal(key, (NUM_EMBEDDINGS, n_atom_basis), dtype=jnp.float32)
    return table.at[0].set(0.0)


def prepare_embedding_params(embed_table):
    """One-time parameter prep (hoisted out of the per-call forward).

    Returns (plain_table, grouped_table, nb, group):
      plain_table   : (128, nb) f32, vocab padded with zero rows
      grouped_table : block-diagonal (group*128, group*nb) f32 table for the
                      lane-dense Pallas kernel (== plain_table when group==1)
    Row 0 is left exactly as stored (PyTorch padding_idx semantics).
    """
    tbl = embed_table.astype(jnp.float32)
    tbl = jnp.pad(tbl, ((0, PADDED_VOCAB - tbl.shape[0]), (0, 0)))   # (128, nb)
    nb = tbl.shape[1]
    if nb < PADDED_VOCAB and PADDED_VOCAB % nb == 0:
        group = min(PADDED_VOCAB // nb, _MAX_GROUP)
    else:
        group = 1
    grouped = jnp.kron(jnp.eye(group, dtype=jnp.float32), tbl) if group > 1 else tbl
    return tbl, grouped, nb, group


def embedding_block_forward(z_number, prepared, *, tile_atoms=None,
                            gather_threshold=2048):
    """PaiNN EmbeddingBlock forward.

    z_number: (num_atoms,) int atomic numbers in [0, 100)
    prepared: output of prepare_embedding_params()
    returns (s_i, v_i) with shapes (num_atoms, nb), (num_atoms, nb, 3)
    """
    plain_tbl, grouped_tbl, nb, group = prepared
    num_atoms = z_number.shape[0]
    z = z_number.astype(jnp.int32)

    # v_i is constant zeros; keep it out of the kernel's store path.  Jit the
    # forward together with its consumer so XLA fuses / elides this fill.
    v_i = jnp.zeros((num_atoms, nb, 3), jnp.float32)

    # Fast path: tiny systems are pure fixed overhead for a pallas_call.
    if num_atoms < gather_threshold:
        # TODO(synk): out-of-range z clamps here (and yields zeros in the Pallas
        # path) instead of raising like PyTorch.
        return jnp.take(plain_tbl, z, axis=0), v_i

    # ----------------------------- Pallas path ------------------------------
    g_total = -(-num_atoms // group)           # grouped output rows
    g_alloc = max(g_total, 8)                  # keep sublane dims 8-aligned
    padded_atoms = g_alloc * group
    if padded_atoms != num_atoms:              # pads only a tiny int vector
        z = jnp.pad(z, (0, padded_atoms - num_atoms))
    zg = z.reshape(g_alloc, group)

    # Block size: ~1 MiB output blocks, 8-aligned on the grouped-row axis,
    # capped so large problems keep >= 2 grid steps (v7x dual-TC sharding).
    if tile_atoms is None:
        tile_atoms = max(8 * group, _TARGET_OUT_BLOCK_BYTES // (nb * 4))
    gm_req = max(8, ((-(-tile_atoms // group)) // 8) * 8)
    half = -(-g_alloc // 2)
    gm_half = -(-half // 8) * 8
    gm = max(8, min(gm_req, gm_half))
    grid = (pl.cdiv(g_alloc, gm),)

    # In-kernel strip-mine chunk: keeps the (chunk, group*128) one-hot small
    # while the DMA block stays large.
    chunk = next(c for c in (64, 32, 16, 8) if gm % c == 0)

    out = pl.pallas_call(
        functools.partial(_embed_kernel, chunk=chunk, group=group),
        out_shape=jax.ShapeDtypeStruct((g_alloc, group * nb), jnp.float32),
        grid_spec=pltpu.PrefetchScalarGridSpec(
            num_scalar_prefetch=0,
            grid=grid,
            in_specs=[
                pl.BlockSpec((gm, group), lambda i: (i, 0)),
                pl.BlockSpec((group * PADDED_VOCAB, group * nb), lambda i: (0, 0)),
            ],
            out_specs=pl.BlockSpec((gm, group * nb), lambda i: (i, 0)),
        ),
        compiler_params=pltpu.CompilerParams(
            dimension_semantics=("parallel",),   # disjoint output blocks
        ),
    )(zg, grouped_tbl)

    s_i = out.reshape(padded_atoms, nb)          # free: contiguous row-major
    if padded_atoms != num_atoms:
        # Only when num_atoms % group != 0 (or num_atoms < 8*group); fuses away
        # with the consumer under jit.
        s_i = s_i[:num_atoms]
    return s_i, v_i


if __name__ == "__main__":
    key = jax.random.PRNGKey(0)
    k_tab, k_z1, k_z2 = jax.random.split(key, 3)

    n_atom_basis = 32
    embed_table = make_embedding_table(k_tab, n_atom_basis)
    prepared = prepare_embedding_params(embed_table)   # one-time param prep

    # Case 1: spec-sized small input; force the Pallas path.
    z1 = jax.random.randint(k_z1, (16,), 0, NUM_EMBEDDINGS, dtype=jnp.int32)
    z1 = z1.at[3].set(0).at[7].set(0)                  # include padding_idx entries
    s1, v1 = embedding_block_forward(z1, prepared, gather_threshold=0)
    jax.block_until_ready((s1, v1))
    ref1 = jnp.take(embed_table, z1, axis=0)
    assert s1.shape == (16, n_atom_basis)
    assert v1.shape == (16, n_atom_basis, 3)
    assert jnp.allclose(s1, ref1, atol=1e-6)
    assert jnp.allclose(v1, 0.0)

    # Case 2: multi-block grid with a ragged (Pallas-masked) last block.
    z2 = jax.random.randint(k_z2, (300,), 0, NUM_EMBEDDINGS, dtype=jnp.int32)
    s2, _ = embedding_block_forward(z2, prepared, tile_atoms=128, gather_threshold=0)
    jax.block_until_ready(s2)
    assert jnp.allclose(s2, jnp.take(embed_table, z2, axis=0), atol=1e-6)

    # Case 3: default dispatch for tiny systems -> XLA gather fast path.
    s3, _ = embedding_block_forward(z1, prepared)
    jax.block_until_ready(s3)
    assert jnp.allclose(s3, ref1, atol=1e-6)

    print("KERNEL_OK")
</pallas_src>

<mosaic_0001>
module attributes {stable_mosaic.version = 11 : i64} {
  func.func @_embed_kernel(%arg0: i32, %arg1: memref<8x4xi32, #tpu.memory_space<vmem>>, %arg2: memref<512x128xf32, #tpu.memory_space<vmem>>, %arg3: memref<8x128xf32, #tpu.memory_space<vmem>>) attributes {dimension_semantics = [#tpu.dimension_semantics<parallel>], iteration_bounds = array<i64: 1>, scalar_prefetch = 0 : i64, scratch_operands = 0 : i64, tpu.core_type = #tpu.core_type<tc>, window_params = [{transform_indices = @transform_0, window_bounds = array<i64: 8, 4>}, {pipeline_mode = #tpu.pipeline_mode<synchronous>, transform_indices = @transform_1, window_bounds = array<i64: 512, 128>}, {transform_indices = @transform_2, window_bounds = array<i64: 8, 128>}]} {
    %c0 = arith.constant 0 : index
    %c0_0 = arith.constant 0 : index
    %0 = vector.load %arg2[%c0, %c0_0] : memref<512x128xf32, #tpu.memory_space<vmem>>, vector<512x128xf32>
    %c0_i32 = arith.constant 0 : i32
    %c8_i32 = arith.constant 8 : i32
    %1 = arith.muli %c0_i32, %c8_i32 : i32
    %2 = tpu.assume_multiple %1, 8 : i32
    %3 = arith.index_cast %2 : i32 to index
    %c0_1 = arith.constant 0 : index
    %4 = vector.load %arg1[%3, %c0_1] : memref<8x4xi32, #tpu.memory_space<vmem>>, vector<8x4xi32>
    %5 = tpu.iota {dimensions = array<i32: 1>} : vector<8x512xi32>
    %cst = arith.constant 0.000000e+00 : f32
    %6 = vector.broadcast %cst : f32 to vector<8x512xf32>
    %7 = vector.extract_strided_slice %4 {offsets = [0, 0], sizes = [8, 1], strides = [1, 1]} : vector<8x4xi32> to vector<8x1xi32>
    %c0_i32_2 = arith.constant 0 : i32
    %8 = vector.broadcast %c0_i32_2 : i32 to vector<8x1xi32>
    %9 = arith.addi %7, %8 : vector<8x1xi32>
    %10 = vector.broadcast %9 : vector<8x1xi32> to vector<8x512xi32>
    %11 = arith.cmpi eq, %5, %10 : vector<8x512xi32>
    %12 = arith.extui %11 : vector<8x512xi1> to vector<8x512xi32>
    %13 = arith.sitofp %12 : vector<8x512xi32> to vector<8x512xf32>
    %14 = arith.addf %6, %13 : vector<8x512xf32>
    %15 = vector.extract_strided_slice %4 {offsets = [0, 1], sizes = [8, 1], strides = [1, 1]} : vector<8x4xi32> to vector<8x1xi32>
    %c128_i32 = arith.constant 128 : i32
    %16 = vector.broadcast %c128_i32 : i32 to vector<8x1xi32>
    %17 = arith.addi %15, %16 : vector<8x1xi32>
    %18 = vector.broadcast %17 : vector<8x1xi32> to vector<8x512xi32>
    %19 = arith.cmpi eq, %5, %18 : vector<8x512xi32>
    %20 = arith.extui %19 : vector<8x512xi1> to vector<8x512xi32>
    %21 = arith.sitofp %20 : vector<8x512xi32> to vector<8x512xf32>
    %22 = arith.addf %14, %21 : vector<8x512xf32>
    %23 = vector.extract_strided_slice %4 {offsets = [0, 2], sizes = [8, 1], strides = [1, 1]} : vector<8x4xi32> to vector<8x1xi32>
    %c256_i32 = arith.constant 256 : i32
    %24 = vector.broadcast %c256_i32 : i32 to vector<8x1xi32>
    %25 = arith.addi %23, %24 : vector<8x1xi32>
    %26 = vector.broadcast %25 : vector<8x1xi32> to vector<8x512xi32>
    %27 = arith.cmpi eq, %5, %26 : vector<8x512xi32>
    %28 = arith.extui %27 : vector<8x512xi1> to vector<8x512xi32>
    %29 = arith.sitofp %28 : vector<8x512xi32> to vector<8x512xf32>
    %30 = arith.addf %22, %29 : vector<8x512xf32>
    %31 = vector.extract_strided_slice %4 {offsets = [0, 3], sizes = [8, 1], strides = [1, 1]} : vector<8x4xi32> to vector<8x1xi32>
    %c384_i32 = arith.constant 384 : i32
    %32 = vector.broadcast %c384_i32 : i32 to vector<8x1xi32>
    %33 = arith.addi %31, %32 : vector<8x1xi32>
    %34 = vector.broadcast %33 : vector<8x1xi32> to vector<8x512xi32>
    %35 = arith.cmpi eq, %5, %34 : vector<8x512xi32>
    %36 = arith.extui %35 : vector<8x512xi1> to vector<8x512xi32>
    %37 = arith.sitofp %36 : vector<8x512xi32> to vector<8x512xf32>
    %38 = arith.addf %30, %37 : vector<8x512xf32>
    %cst_3 = arith.constant dense<0.000000e+00> : vector<8x128xf32>
    %39 = tpu.matmul %38, %0, %cst_3 {dimension_numbers = #tpu.dot_dimension_numbers<[1], [0], [0], [1], [0, 0, 1, 1], [], []>} : vector<8x512xf32>, vector<512x128xf32>, vector<8x128xf32> -> vector<8x128xf32>
    %40 = arith.index_cast %2 : i32 to index
    %c0_4 = arith.constant 0 : index
    %41 = vector.load %arg3[%40, %c0_4] : memref<8x128xf32, #tpu.memory_space<vmem>>, vector<8x128xf32>
    tpu.vector_store %arg3[%40, %c0_4], %39 {strides = array<i32>} : memref<8x128xf32, #tpu.memory_space<vmem>>, vector<8x128xf32>,
    %c1_i32 = arith.constant 1 : i32
    return
  }
  func.func @transform_0(%arg0: i32) -> (i32, i32) {
    %c0_i32 = arith.constant 0 : i32
    %c0_i32_0 = arith.constant 0 : i32
    return %arg0, %c0_i32 : i32, i32
  }
  func.func @transform_1(%arg0: i32) -> (i32, i32) {
    %c0_i32 = arith.constant 0 : i32
    %c0_i32_0 = arith.constant 0 : i32
    %c0_i32_1 = arith.constant 0 : i32
    return %c0_i32, %c0_i32_0 : i32, i32
  }
  func.func @transform_2(%arg0: i32) -> (i32, i32) {
    %c0_i32 = arith.constant 0 : i32
    %c0_i32_0 = arith.constant 0 : i32
    return %arg0, %c0_i32 : i32, i32
  }
}

</mosaic_0001>

<bundles_post_ra>
// kernel: tpu_custom_call.1
= control target key start
LH: loop header
LB: loop body
LE: loop exit
PB: predicated region body
PF: predicated region fallthrough
CT: control target
= control target key end

     0   :  { %7 = vsyncpa [#allocation3], 0  ;;  %s511_s0 = inlined_call_operand.vmem [shape: s32[8,4], index: 0, kind: input, shape index: {}]   ;;  %s512_s1 = inlined_call_operand.hbm [shape: f32[512,128], index: 1, kind: input, shape index: {}]   ;;  %s513_s2 = inlined_call_operand.hbm [shape: f32[8,128], index: 2, kind: output, shape index: {}]  }
   0x1   :  { %8 = vsyncpa [#allocation4], 0  ;;  %s475_s9 = smov [#allocation2]  }
   0x2   :  { %s16_s10 = sshll.u32 %s475_s9, 4  ;;  %s17_s10 = int_to_ptr.vmem [resolvable:$true] %s16_s10 }
   0x3   :  { %s439_s11 = scalar_lea.vmem %s17_s10, 8192  ;;  %p444_p1 = scmp.lt.s32.totalorder %s17_s10, %s17_s10 }
   0x4   :  { %p440_p0 = scmp.ne.s32.totalorder %s17_s10, %s439_s11  ;;  %p445_p2 = scmp.lt.s32.totalorder %s439_s11, %s439_s11 }
   0x6   :  { %p446_p3 = por %p445_p2, %p444_p1 }
   0x8   :  { %p447_p4 = pnand %p446_p3, %p440_p0 }
   0xa   :  { %450 = shalt.err (!%p447_p4)
}
   0xb   :  { %s476_s12 = smov 128   ;;  %s477_s13 = smov 8  }
   0xc   :  { %22 = dma.hbm_to_vmem [thread:$0]  %s512_s1, 8192, %s17_s10, [#allocation3], %s476_s12, %s476_s12, %s477_s13  }
   0xd   :  { %471 = dma.done.wait [#allocation3], 8192  }
   0xe   :  { %472 = vsyncadd [#allocation3], 4294959104  ;;  %v478_v0 = vmov 0   ;;  %v479_v1 = vmov 2   ;;  %v90_v2 = vld [vmem:[%s511_s0] sm:$0xff]  ;;  %v57_v3 = vld [vmem:[#allocation2 + $0xf8] sm:$0xff] }
   0xf   :  { %426 = vset.pattern.permute.xlu0 %v478_v0  ;;  %428 = vset.pattern.permute.xlu1 %v479_v1  ;;  %v89_v4 = vld [vmem:[#allocation2 + $0x1f8] sm:$0xff]  ;;  %v135_v5 = vadd.s32 256, %v90_v2  ;;  %v56_v8 = vld [vmem:[#allocation2 + $0xf0] sm:$0xff]  ;;  %v115_v9 = vadd.s32 128, %v90_v2  ;;  %v155_v13 = vadd.s32 384, %v90_v2  ;;  %v55_v14 = vld [vmem:[#allocation2 + $0xe8] sm:$0xff] }
  0x10   :  { %97 = vperm.xlu0 %426, %v90_v2   ;;  %347 = vmatprep.subr.mxu0 %v57_v3  ;;  %v41_v6 = vld [vmem:[#allocation2 + $0x78] sm:$0xff]  ;;  %v88_v10 = vld [vmem:[#allocation2 + $0x1f0] sm:$0xff]  ;;  %v480_v15 = vmov 1   ;;  %v87_v16 = vld [vmem:[#allocation2 + $0x1e8] sm:$0xff]  ;;  %v481_v19 = vmov 3   ;;  %s483_s0 = smov [#allocation5]  }
  0x11   :  { %v73_v7 = vld [vmem:[#allocation2 + $0x178] sm:$0xff]  ;;  %382 = vmatprep.subr.mxu1 %v89_v4  ;;  %348 = vmatpush3.msra.mxu0 %v41_v6  ;;  %v40_v11 = vld [vmem:[#allocation2 + $0x70] sm:$0xff]  ;;  %v39_v17 = vld [vmem:[#allocation2 + $0x68] sm:$0xff]  ;;  %s322_s1 = sshll.u32 %s483_s0, 4  ;;  %s323_s1 = int_to_ptr.vmem [resolvable:$true] %s322_s1 }
  0x12   :  { %137 = vperm.xlu1 %428, %v135_v5   ;;  %383 = vmatpush3.msra.mxu1 %v73_v7  ;;  %v72_v12 = vld [vmem:[#allocation2 + $0x170] sm:$0xff]  ;;  %v71_v18 = vld [vmem:[#allocation2 + $0x168] sm:$0xff]  ;;  %v54_v20 = vld [vmem:[#allocation2 + $0xe0] sm:$0xff]  ;;  %s451_s18 = scalar_lea.vmem %s323_s1, 128  ;;  %p456_p6 = scmp.lt.s32.totalorder %s323_s1, %s323_s1 }
  0x13   :  { %349 = vmatprep.subr.mxu0 %v56_v8  ;;  %384 = vmatprep.subr.mxu1 %v88_v10  ;;  %v86_v21 = vld [vmem:[#allocation2 + $0x1e0] sm:$0xff]  ;;  %v53_v24 = vld [vmem:[#allocation2 + $0xd8] sm:$0xff]  ;;  %v52_v28 = vld [vmem:[#allocation2 + $0xd0] sm:$0xff]  ;;  %v91_v8 = vlaneseq  ;;  %p452_p5 = scmp.ne.s32.totalorder %s323_s1, %s451_s18  ;;  %p457_p7 = scmp.lt.s32.totalorder %s451_s18, %s451_s18 }
  0x14   :  { %427 = vset.pattern.permute.xlu0 %v480_v15  ;;  %350 = vmatpush3.msra.mxu0 %v40_v11  ;;  %v38_v22 = vld [vmem:[#allocation2 + $0x60] sm:$0xff]  ;;  %v85_v25 = vld [vmem:[#allocation2 + $0x1d8] sm:$0xff]  ;;  %v84_v29 = vld [vmem:[#allocation2 + $0x1d0] sm:$0xff]  ;;  %v482_v15 = vmov 0.0  }
  0x15   :  { %117 = vperm.xlu0 %427, %v115_v9   ;;  %385 = vmatpush3.msra.mxu1 %v72_v12  ;;  %v70_v23 = vld [vmem:[#allocation2 + $0x160] sm:$0xff]  ;;  %v37_v26 = vld [vmem:[#allocation2 + $0x58] sm:$0xff]  ;;  %v36_v30 = vld [vmem:[#allocation2 + $0x50] sm:$0xff]  ;;  %v92_v9 = vand.u32 127, %v91_v8  ;;  %p458_p8 = por %p457_p7, %p456_p6 }
  0x16   :  { %429 = vset.pattern.permute.xlu1 %v481_v19  ;;  %351 = vmatprep.subr.mxu0 %v55_v14  ;;  %v69_v27 = vld [vmem:[#allocation2 + $0x158] sm:$0xff]  ;;  %v68_v31 = vld [vmem:[#allocation2 + $0x150] sm:$0xff]  ;;  %v51_v32 = vld [vmem:[#allocation2 + $0xc8] sm:$0xff] }
  0x17   :  { %157 = vperm.xlu1 %429, %v155_v13   ;;  %386 = vmatprep.subr.mxu1 %v87_v16  ;;  %v83_v33 = vld [vmem:[#allocation2 + $0x1c8] sm:$0xff]  ;;  %v50_v36 = vld [vmem:[#allocation2 + $0xc0] sm:$0xff]  ;;  %v49_v40 = vld [vmem:[#allocation2 + $0xb8] sm:$0xff]  ;;  %v93_v10 = vadd.s32 128, %v92_v9  ;;  %v94_v11 = vadd.s32 256, %v92_v9  ;;  %v95_v12 = vadd.s32 384, %v92_v9  ;;  %p459_p9 = pnand %p458_p8, %p452_p5 }
  0x18   :  { %352 = vmatpush3.msra.mxu0 %v39_v17  ;;  %387 = vmatpush3.msra.mxu1 %v71_v18  ;;  %v35_v34 = vld [vmem:[#allocation2 + $0x48] sm:$0xff]  ;;  %v82_v37 = vld [vmem:[#allocation2 + $0x1c0] sm:$0xff]  ;;  %v81_v41 = vld [vmem:[#allocation2 + $0x1b8] sm:$0xff] }
  0x19   :  { %353 = vmatprep.subr.mxu0 %v54_v20  ;;  %388 = vmatprep.subr.mxu1 %v86_v21  ;;  %v67_v35 = vld [vmem:[#allocation2 + $0x148] sm:$0xff]  ;;  %v34_v38 = vld [vmem:[#allocation2 + $0x40] sm:$0xff]  ;;  %v33_v42 = vld [vmem:[#allocation2 + $0x38] sm:$0xff] }
  0x1a   :  { %354 = vmatpush3.msra.mxu0 %v38_v22  ;;  %389 = vmatpush3.msra.mxu1 %v70_v23  ;;  %v66_v39 = vld [vmem:[#allocation2 + $0x140] sm:$0xff]  ;;  %v65_v43 = vld [vmem:[#allocation2 + $0x138] sm:$0xff]  ;;  %v48_v44 = vld [vmem:[#allocation2 + $0xb0] sm:$0xff] }
  0x1b   :  { %355 = vmatprep.subr.mxu0 %v53_v24  ;;  %390 = vmatprep.subr.mxu1 %v85_v25  ;;  %v80_v45 = vld [vmem:[#allocation2 + $0x1b0] sm:$0xff]  ;;  %v47_v48 = vld [vmem:[#allocation2 + $0xa8] sm:$0xff]  ;;  %v46_v52 = vld [vmem:[#allocation2 + $0xa0] sm:$0xff] }
  0x1c   :  { %356 = vmatpush3.msra.mxu0 %v37_v26  ;;  %391 = vmatpush3.msra.mxu1 %v69_v27  ;;  %v32_v46 = vld [vmem:[#allocation2 + $0x30] sm:$0xff]  ;;  %v79_v49 = vld [vmem:[#allocation2 + $0x1a8] sm:$0xff]  ;;  %v78_v53 = vld [vmem:[#allocation2 + $0x1a0] sm:$0xff] }
  0x1d   :  { %357 = vmatprep.subr.mxu0 %v52_v28  ;;  %392 = vmatprep.subr.mxu1 %v84_v29  ;;  %v64_v47 = vld [vmem:[#allocation2 + $0x130] sm:$0xff]  ;;  %v31_v50 = vld [vmem:[#allocation2 + $0x28] sm:$0xff]  ;;  %v30_v54 = vld [vmem:[#allocation2 + $0x20] sm:$0xff] }
  0x1e   :  { %358 = vmatpush3.msra.mxu0 %v36_v30  ;;  %393 = vmatpush3.msra.mxu1 %v68_v31  ;;  %v63_v51 = vld [vmem:[#allocation2 + $0x128] sm:$0xff]  ;;  %v62_v55 = vld [vmem:[#allocation2 + $0x120] sm:$0xff]  ;;  %v45_v56 = vld [vmem:[#allocation2 + $0x98] sm:$0xff] }
  0x1f   :  { %359 = vmatprep.subr.mxu0 %v51_v32  ;;  %394 = vmatprep.subr.mxu1 %v83_v33  ;;  %v77_v57 = vld [vmem:[#allocation2 + $0x198] sm:$0xff]  ;;  %v44_v60 = vld [vmem:[#allocation2 + $0x90] sm:$0xff]  ;;  %v43_v0 = vld [vmem:[#allocation2 + $0x88] sm:$0xff] }
  0x20   :  { %360 = vmatpush3.msra.mxu0 %v35_v34  ;;  %395 = vmatpush3.msra.mxu1 %v67_v35  ;;  %v29_v58 = vld [vmem:[#allocation2 + $0x18] sm:$0xff]  ;;  %v76_v61 = vld [vmem:[#allocation2 + $0x190] sm:$0xff]  ;;  %v75_v1 = vld [vmem:[#allocation2 + $0x188] sm:$0xff] }
  0x21   :  { %361 = vmatprep.subr.mxu0 %v50_v36  ;;  %396 = vmatprep.subr.mxu1 %v82_v37  ;;  %v61_v59 = vld [vmem:[#allocation2 + $0x118] sm:$0xff]  ;;  %v28_v62 = vld [vmem:[#allocation2 + $0x10] sm:$0xff]  ;;  %v27_v2 = vld [vmem:[#allocation2 + $0x8] sm:$0xff] }
  0x22   :  { %362 = vmatpush3.msra.mxu0 %v34_v38  ;;  %397 = vmatpush3.msra.mxu1 %v66_v39  ;;  %v60_v63 = vld [vmem:[#allocation2 + $0x110] sm:$0xff]  ;;  %v59_v3 = vld [vmem:[#allocation2 + $0x108] sm:$0xff]  ;;  %v42_v4 = vld [vmem:[#allocation2 + $0x80] sm:$0xff] }
  0x23   :  { %363 = vmatprep.subr.mxu0 %v49_v40  ;;  %398 = vmatprep.subr.mxu1 %v81_v41  ;;  %v74_v5 = vld [vmem:[#allocation2 + $0x180] sm:$0xff] }
  0x24   :  { %364 = vmatpush3.msra.mxu0 %v33_v42  ;;  %399 = vmatpush3.msra.mxu1 %v65_v43  ;;  %v26_v6 = vld [vmem:[#allocation2] sm:$0xff] }
  0x25   :  { %365 = vmatprep.subr.mxu0 %v48_v44  ;;  %400 = vmatprep.subr.mxu1 %v80_v45  ;;  %v58_v7 = vld [vmem:[#allocation2 + $0x100] sm:$0xff] }
  0x26   :  { %366 = vmatpush3.msra.mxu0 %v32_v46  ;;  %401 = vmatpush3.msra.mxu1 %v64_v47 }
  0x27   :  { %367 = vmatprep.subr.mxu0 %v47_v48  ;;  %402 = vmatprep.subr.mxu1 %v79_v49 }
  0x28   :  { %368 = vmatpush3.msra.mxu0 %v31_v50  ;;  %403 = vmatpush3.msra.mxu1 %v63_v51 }
  0x29   :  { %369 = vmatprep.subr.mxu0 %v46_v52  ;;  %404 = vmatprep.subr.mxu1 %v78_v53 }
  0x2a   :  { %370 = vmatpush3.msra.mxu0 %v30_v54  ;;  %405 = vmatpush3.msra.mxu1 %v62_v55 }
  0x2b   :  { %371 = vmatprep.subr.mxu0 %v45_v56  ;;  %406 = vmatprep.subr.mxu1 %v77_v57 }
  0x2c   :  { %372 = vmatpush3.msra.mxu0 %v29_v58  ;;  %407 = vmatpush3.msra.mxu1 %v61_v59 }
  0x2d   :  { %373 = vmatprep.subr.mxu0 %v44_v60  ;;  %408 = vmatprep.subr.mxu1 %v76_v61 }
  0x2e   :  { %374 = vmatpush3.msra.mxu0 %v28_v62  ;;  %409 = vmatpush3.msra.mxu1 %v60_v63 }
  0x2f   :  { %375 = vmatprep.subr.mxu0 %v43_v0  ;;  %410 = vmatprep.subr.mxu1 %v75_v1 }
  0x30   :  { %376 = vmatpush3.msra.mxu0 %v27_v2  ;;  %411 = vmatpush3.msra.mxu1 %v59_v3 }
  0x31   :  { %377 = vmatprep.subr.mxu0 %v42_v4  ;;  %412 = vmatprep.subr.mxu1 %v74_v5 }
  0x32   :  { %378 = vmatpush3.msra.mxu0 %v26_v6  ;;  %413 = vmatpush3.msra.mxu1 %v58_v7 }
  0x33   :  { %430 = vset.pattern.permute.xlu0 %v481_v19 }
  0x8b   :  { %v98_v13 = vpop.permute.xlu0 %97 }
  0x8c   :  { %vm99_vm0 = vcmp.eq.s32.totalorder %v92_v9, %v98_v13  ;;  %vm100_vm1 = vcmp.eq.s32.totalorder %v93_v10, %v98_v13  ;;  %vm101_vm2 = vcmp.eq.s32.totalorder %v94_v11, %v98_v13  ;;  %vm102_vm3 = vcmp.eq.s32.totalorder %v95_v12, %v98_v13 }
  0x8d   :  { %v138_v14 = vpop.permute.xlu1 %137  ;;  %v331_v16 = vsel %vm99_vm0, 1.0, %v482_v15  ;;  %v333_v17 = vsel %vm101_vm2, 1.0, %v482_v15  ;;  %v332_v18 = vsel %vm100_vm1, 1.0, %v482_v15  ;;  %v334_v20 = vsel %vm102_vm3, 1.0, %v482_v15 }
  0x8e   :  { %vm139_vm4 = vcmp.eq.s32.totalorder %v92_v9, %v138_v14  ;;  %vm141_vm5 = vcmp.eq.s32.totalorder %v94_v11, %v138_v14  ;;  %vm140_vm6 = vcmp.eq.s32.totalorder %v93_v10, %v138_v14  ;;  %vm142_vm7 = vcmp.eq.s32.totalorder %v95_v12, %v138_v14 }
  0x8f   :  { %v339_v19 = vsel %vm139_vm4, 1.0, %v482_v15  ;;  %v341_v21 = vsel %vm141_vm5, 1.0, %v482_v15  ;;  %v340_v23 = vsel %vm140_vm6, 1.0, %v482_v15  ;;  %v342_v38 = vsel %vm142_vm7, 1.0, %v482_v15 }
  0x90   :  { %v118_v22 = vpop.permute.xlu0 %117 }
  0x91   :  { %vm119_vm8 = vcmp.eq.s32.totalorder %v92_v9, %v118_v22  ;;  %vm120_vm9 = vcmp.eq.s32.totalorder %v93_v10, %v118_v22  ;;  %vm121_vm10 = vcmp.eq.s32.totalorder %v94_v11, %v118_v22  ;;  %vm122_vm11 = vcmp.eq.s32.totalorder %v95_v12, %v118_v22 }
  0x92   :  { %v335_v24 = vsel %vm119_vm8, 1.0, %v482_v15  ;;  %v336_v25 = vsel %vm120_vm9, 1.0, %v482_v15  ;;  %v337_v26 = vsel %vm121_vm10, 1.0, %v482_v15  ;;  %v338_v27 = vsel %vm122_vm11, 1.0, %v482_v15  ;;  %v158_v28 = vpop.permute.xlu1 %157 }
  0x93   :  { %v131_v29 = vadd.f32 %v335_v24, %v331_v16  ;;  %v133_v30 = vadd.f32 %v337_v26, %v333_v17  ;;  %vm159_vm12 = vcmp.eq.s32.totalorder %v92_v9, %v158_v28  ;;  %vm161_vm13 = vcmp.eq.s32.totalorder %v94_v11, %v158_v28 }
  0x94   :  { %v343_v31 = vsel %vm159_vm12, 1.0, %v482_v15  ;;  %v345_v32 = vsel %vm161_vm13, 1.0, %v482_v15  ;;  %v132_v33 = vadd.f32 %v336_v25, %v332_v18  ;;  %vm160_vm14 = vcmp.eq.s32.totalorder %v93_v10, %v158_v28 }
  0x95   :  { %v344_v34 = vsel %vm160_vm14, 1.0, %v482_v15  ;;  %v134_v35 = vadd.f32 %v338_v27, %v334_v20  ;;  %vm162_vm15 = vcmp.eq.s32.totalorder %v95_v12, %v158_v28  ;;  %v151_v36 = vadd.f32 %v339_v19, %v131_v29 }
  0x96   :  { %v152_v37 = vadd.f32 %v340_v23, %v132_v33  ;;  %v346_v39 = vsel %vm162_vm15, 1.0, %v482_v15  ;;  %v153_v40 = vadd.f32 %v341_v21, %v133_v30 }
  0x97   :  { %v154_v41 = vadd.f32 %v342_v38, %v134_v35  ;;  %v171_v42 = vadd.f32 %v343_v31, %v151_v36 }
  0x98   :  { %v172_v43 = vadd.f32 %v344_v34, %v152_v37  ;;  %v173_v44 = vadd.f32 %v345_v32, %v153_v40 }
  0x99   :  { %v174_v45 = vadd.f32 %v346_v39, %v154_v41 }
  0x9a   :  { %239 = vmatprep.mubr.f32.mxu0 %v172_v43 }
  0x9b   :  { %309 = vmatprep.mubr.f32.mxu1 %v174_v45  ;;  %240 = vmatmul.mubr.f32.vlgmr.msra.gmra.mxu0 %v171_v42 }
  0x9c   :  { %310 = vmatmul.mubr.f32.vlgmr.msra.gmra.mxu1 %v173_v44 }
 0x15b   :  { %v379_v46 = vpop.f32.mrf.mxu0 }
 0x15c   :  { %v414_v47 = vpop.f32.mrf.mxu1 }
 0x15d   :  { %v380_v48 = vpop.f32.mrf.mxu0 }
 0x15e   :  { %v381_v49 = vadd.f32 %v380_v48, %v379_v46  ;;  %v415_v50 = vpop.f32.mrf.mxu1 }
 0x15f   :  { %v416_v51 = vadd.f32 %v415_v50, %v414_v47 }
 0x161   :  { %v312_v52 = vadd.f32 %v416_v51, %v381_v49 }
 0x163   :  { %315 = vst [vmem:[#allocation5] sm:$0xff] %v312_v52 }
 0x164   :  { %462 = shalt.err (!%p459_p9)
}
 0x165   :  { %325 = dma.vmem_to_hbm [thread:$0]  %s323_s1, 128, %s513_s2, [#allocation4]  }
 0x166   :  { %473 = dma.done.wait [#allocation4], 128  }
 0x167   :  { %474 = vsyncadd [#allocation4], 4294967168 }
 0x168   :  { %329 = vsyncpa [#allocation3], 1 }
 0x169   :  { %330 = vsyncpa [#allocation4], 1 }

</bundles_post_ra>
